<compile_context>
chip_gen: v5e
topology: v5e:2x2
jax: 0.10.0
libtpu: 0.0.40
codegen_flags: <defaults>
</compile_context>

<pallas_src>
import jax
import jax.numpy as jnp
from jax.experimental import pallas as pl
from jax.experimental.pallas import tpu as pltpu

LANE = 128  # padded lane width for hidden/feature/class dims


def _gnn_kernel(x_ref, adj_ref, pool_ref,
                wc_ref, wf1_ref, bf1_ref, wf2_ref, bf2_ref,
                out_ref):
    # x_ref:    [N, 128]       bf16 (features; one column carries a constant 1.0)
    # adj_ref:  [N, N]         bf16 (adj[i, j] = #edges j -> i, exact integers)
    # pool_ref: [G, N]         bf16 (pool[g, i] = 1 iff batch[i] == g)
    # wc_ref:   [5, 256, 128]  bf16 fused conv weights (W_rel ; W_root + bias row)
    # wf1/wf2:  [128, 128]     bf16 ; bf1/bf2: [1, 128] f32
    #                          (bf2 padded class lanes preloaded with -1e30)
    # out_ref:  [G, 128]       f32 lane-dense slab; first num_classes cols valid
    adj = adj_ref[...]
    h = x_ref[...]                                     # bf16 [N, 128]

    # ---- conv1..conv5: one fused MXU matmul per layer, bias folded in -------
    for l in range(5):                                 # static unroll (5 tiny iters)
        agg = jnp.dot(adj, h, preferred_element_type=jnp.float32)       # [N,128] f32
        cat = jnp.concatenate([agg.astype(jnp.bfloat16), h], axis=-1)   # [N,256] bf16
        h = jnp.maximum(
            jnp.dot(cat, wc_ref[l], preferred_element_type=jnp.float32), 0.0)
        h = h.astype(jnp.bfloat16)
    # F.dropout(p=0.5) layers are identities (inference mode).

    # ---- global_add_pool -----------------------------------------------------
    g = jnp.dot(pool_ref[...], h, preferred_element_type=jnp.float32)   # [G,128] f32

    # ---- fc1 + ReLU ----------------------------------------------------------
    g = jnp.maximum(
        jnp.dot(g.astype(jnp.bfloat16), wf1_ref[...],
                preferred_element_type=jnp.float32) + bf1_ref[...], 0.0)

    # ---- fc2 + LogSoftmax (padded lanes already at -1e30 via bf2) -----------
    logits = (jnp.dot(g.astype(jnp.bfloat16), wf2_ref[...],
                      preferred_element_type=jnp.float32) + bf2_ref[...])  # [G,128]
    m = jnp.max(logits, axis=-1, keepdims=True)
    z = logits - m
    lse = jnp.log(jnp.sum(jnp.exp(z), axis=-1, keepdims=True))
    out_ref[...] = z - lse


def gnn_forward(x, adj, pool, params, num_classes):
    N, fin = x.shape
    G = pool.shape[0]
    H = params["wf1"].shape[0]        # logical hidden dim
    HP = LANE
    assert fin + 1 <= HP and H + 1 <= HP and num_classes <= HP

    f32, bf16 = jnp.float32, jnp.bfloat16
    const1 = H                        # hidden column carrying the constant-1 channel

    # Node features padded to 128 lanes; column `fin` = 1.0 feeds the layer-1 bias.
    xp = jnp.zeros((N, HP), f32).at[:, :fin].set(x).at[:, fin].set(1.0)

    def fuse(w_rel, w_root, b, in_dim, carrier_row):
        # Stacked [2*HP, HP] weight: rows 0:HP act on adj@h, rows HP:2HP on h.
        w = jnp.zeros((2 * HP, HP), f32)
        w = w.at[:in_dim, :H].set(w_rel)                       # neighbor-sum path
        w = w.at[HP:HP + in_dim, :H].set(w_root)               # root path
        w = w.at[HP + carrier_row, :H].set(b.reshape(-1))      # folded bias
        w = w.at[HP + carrier_row, const1].set(1.0)            # regenerate const-1
        return w

    wc = jnp.stack(
        [fuse(params["w1r"], params["w1s"], params["b1"], fin, fin)]
        + [fuse(params["wkr"][l], params["wks"][l], params["bk"][l], H, const1)
           for l in range(4)],
        axis=0)                                                # [5, 2*HP, HP]

    wf1 = jnp.zeros((HP, HP), f32).at[:H, :H].set(params["wf1"])
    bf1 = jnp.zeros((1, HP), f32).at[:, :H].set(params["bf1"])
    wf2 = jnp.zeros((HP, HP), f32).at[:H, :num_classes].set(params["wf2"])
    # Padded class lanes get -1e30 so log_softmax needs no in-kernel masking.
    bf2 = jnp.full((1, HP), -1e30, f32).at[:, :num_classes].set(
        params["bf2"].reshape(-1))

    # bf16 MXU operands with f32 accumulation (adj/pool stay exact).
    args = (xp.astype(bf16), adj.astype(bf16), pool.astype(bf16),
            wc.astype(bf16), wf1.astype(bf16), bf1, wf2.astype(bf16), bf2)

    vmem = pl.BlockSpec(memory_space=pltpu.MemorySpace.VMEM)
    out = pl.pallas_call(
        _gnn_kernel,
        out_shape=jax.ShapeDtypeStruct((G, HP), jnp.float32),
        in_specs=[vmem] * len(args),
        out_specs=vmem,
    )(*args)
    return out[:, :num_classes]


def gnn_reference(x, adj, pool, params):
    """Pure-JAX f32 reference of the same forward pass (unfused, unpadded)."""
    h = jnp.maximum(adj @ x @ params["w1r"] + params["b1"] + x @ params["w1s"], 0.0)
    for l in range(4):
        h = jnp.maximum(adj @ h @ params["wkr"][l] + params["bk"][l]
                        + h @ params["wks"][l], 0.0)
    g = pool @ h
    g = jnp.maximum(g @ params["wf1"] + params["bf1"], 0.0)
    logits = g @ params["wf2"] + params["bf2"]
    return jax.nn.log_softmax(logits, axis=-1)


def init_params(key, node_features_dim, hidden_dim, num_classes):
    ks = jax.random.split(key, 10)
    s = 0.1
    # GraphConv weights stored pre-transposed ([in, out]) for right-multiply.
    return {
        "w1r": s * jax.random.normal(ks[0], (node_features_dim, hidden_dim), jnp.float32),
        "w1s": s * jax.random.normal(ks[1], (node_features_dim, hidden_dim), jnp.float32),
        "b1":  s * jax.random.normal(ks[2], (1, hidden_dim), jnp.float32),
        "wkr": s * jax.random.normal(ks[3], (4, hidden_dim, hidden_dim), jnp.float32),
        "wks": s * jax.random.normal(ks[4], (4, hidden_dim, hidden_dim), jnp.float32),
        "bk":  s * jax.random.normal(ks[5], (4, 1, hidden_dim), jnp.float32),
        "wf1": s * jax.random.normal(ks[6], (hidden_dim, hidden_dim), jnp.float32),
        "bf1": s * jax.random.normal(ks[7], (1, hidden_dim), jnp.float32),
        "wf2": s * jax.random.normal(ks[8], (hidden_dim, num_classes), jnp.float32),
        "bf2": s * jax.random.normal(ks[9], (1, num_classes), jnp.float32),
    }


if __name__ == "__main__":
    key = jax.random.PRNGKey(0)
    k_x, k_p = jax.random.split(key)

    num_classes = 4
    hidden_dim = 32
    node_features_dim = 16
    num_nodes = 16
    num_graphs = 2

    # Node features.
    x = jax.random.normal(k_x, (num_nodes, node_features_dim), jnp.float32)

    # Batch assignment: first 8 nodes -> graph 0, next 8 -> graph 1.
    batch = jnp.concatenate([jnp.zeros(8, jnp.int32), jnp.ones(8, jnp.int32)])

    # Edge index: bidirectional ring inside each graph of 8 nodes.
    src_list, dst_list = [], []
    for g in range(num_graphs):
        off = g * 8
        for i in range(8):
            a, b = off + i, off + (i + 1) % 8
            src_list += [a, b]
            dst_list += [b, a]
    src = jnp.array(src_list, jnp.int32)
    dst = jnp.array(dst_list, jnp.int32)

    # Dense adjacency: adj[i, j] = number of edges j -> i.
    adj = jnp.zeros((num_nodes, num_nodes), jnp.float32).at[dst, src].add(1.0)

    # Pooling matrix: pool[g, i] = 1 if batch[i] == g.
    pool = (batch[None, :] == jnp.arange(num_graphs)[:, None]).astype(jnp.float32)

    params = init_params(k_p, node_features_dim, hidden_dim, num_classes)

    out = gnn_forward(x, adj, pool, params, num_classes)
    out = jax.block_until_ready(out)

    ref = gnn_reference(x, adj, pool, params)
    assert out.shape == (num_graphs, num_classes)
    # bf16 MXU operands (f32 accumulate) -> relaxed tolerance.
    assert jnp.allclose(out, ref, atol=5e-2, rtol=5e-2), (out, ref)

    print("KERNEL_OK")
</pallas_src>

<mosaic_0001>
module attributes {stable_mosaic.version = 11 : i64} {
  func.func @_gnn_kernel(%arg0: memref<16x128xbf16, #tpu.memory_space<vmem>>, %arg1: memref<16x16xbf16, #tpu.memory_space<vmem>>, %arg2: memref<2x16xbf16, #tpu.memory_space<vmem>>, %arg3: memref<5x256x128xbf16, #tpu.memory_space<vmem>>, %arg4: memref<128x128xbf16, #tpu.memory_space<vmem>>, %arg5: memref<1x128xf32, #tpu.memory_space<vmem>>, %arg6: memref<128x128xbf16, #tpu.memory_space<vmem>>, %arg7: memref<1x128xf32, #tpu.memory_space<vmem>>, %arg8: memref<2x128xf32, #tpu.memory_space<vmem>>) attributes {dimension_semantics = [], scalar_prefetch = 0 : i64, scratch_operands = 0 : i64, tpu.core_type = #tpu.core_type<tc>} {
    %c0 = arith.constant 0 : index
    %c0_0 = arith.constant 0 : index
    %0 = vector.load %arg1[%c0, %c0_0] : memref<16x16xbf16, #tpu.memory_space<vmem>>, vector<16x16xbf16>
    %c0_1 = arith.constant 0 : index
    %c0_2 = arith.constant 0 : index
    %1 = vector.load %arg0[%c0_1, %c0_2] : memref<16x128xbf16, #tpu.memory_space<vmem>>, vector<16x128xbf16>
    %cst = arith.constant dense<0.000000e+00> : vector<16x128xf32>
    %2 = tpu.matmul %0, %1, %cst {dimension_numbers = #tpu.dot_dimension_numbers<[1], [0], [0], [1], [0, 0, 1, 1], [], []>} : vector<16x16xbf16>, vector<16x128xbf16>, vector<16x128xf32> -> vector<16x128xf32>
    %3 = arith.truncf %2 : vector<16x128xf32> to vector<16x128xbf16>
    %4 = tpu.concatenate %3, %1 in 1 : vector<16x128xbf16>, vector<16x128xbf16> -> vector<16x256xbf16>
    %c0_3 = arith.constant 0 : index
    %c0_4 = arith.constant 0 : index
    %c0_5 = arith.constant 0 : index
    %5 = vector.load %arg3[%c0_3, %c0_4, %c0_5] : memref<5x256x128xbf16, #tpu.memory_space<vmem>>, vector<1x256x128xbf16>
    %6 = vector.shape_cast %5 : vector<1x256x128xbf16> to vector<256x128xbf16>
    %cst_6 = arith.constant dense<0.000000e+00> : vector<16x128xf32>
    %7 = tpu.matmul %4, %6, %cst_6 {dimension_numbers = #tpu.dot_dimension_numbers<[1], [0], [0], [1], [0, 0, 1, 1], [], []>} : vector<16x256xbf16>, vector<256x128xbf16>, vector<16x128xf32> -> vector<16x128xf32>
    %cst_7 = arith.constant 0.000000e+00 : f32
    %8 = vector.broadcast %cst_7 : f32 to vector<16x128xf32>
    %9 = arith.maximumf %7, %8 : vector<16x128xf32>
    %10 = arith.truncf %9 : vector<16x128xf32> to vector<16x128xbf16>
    %cst_8 = arith.constant dense<0.000000e+00> : vector<16x128xf32>
    %11 = tpu.matmul %0, %10, %cst_8 {dimension_numbers = #tpu.dot_dimension_numbers<[1], [0], [0], [1], [0, 0, 1, 1], [], []>} : vector<16x16xbf16>, vector<16x128xbf16>, vector<16x128xf32> -> vector<16x128xf32>
    %12 = arith.truncf %11 : vector<16x128xf32> to vector<16x128xbf16>
    %13 = tpu.concatenate %12, %10 in 1 : vector<16x128xbf16>, vector<16x128xbf16> -> vector<16x256xbf16>
    %c1 = arith.constant 1 : index
    %c0_9 = arith.constant 0 : index
    %c0_10 = arith.constant 0 : index
    %14 = vector.load %arg3[%c1, %c0_9, %c0_10] : memref<5x256x128xbf16, #tpu.memory_space<vmem>>, vector<1x256x128xbf16>
    %15 = vector.shape_cast %14 : vector<1x256x128xbf16> to vector<256x128xbf16>
    %cst_11 = arith.constant dense<0.000000e+00> : vector<16x128xf32>
    %16 = tpu.matmul %13, %15, %cst_11 {dimension_numbers = #tpu.dot_dimension_numbers<[1], [0], [0], [1], [0, 0, 1, 1], [], []>} : vector<16x256xbf16>, vector<256x128xbf16>, vector<16x128xf32> -> vector<16x128xf32>
    %cst_12 = arith.constant 0.000000e+00 : f32
    %17 = vector.broadcast %cst_12 : f32 to vector<16x128xf32>
    %18 = arith.maximumf %16, %17 : vector<16x128xf32>
    %19 = arith.truncf %18 : vector<16x128xf32> to vector<16x128xbf16>
    %cst_13 = arith.constant dense<0.000000e+00> : vector<16x128xf32>
    %20 = tpu.matmul %0, %19, %cst_13 {dimension_numbers = #tpu.dot_dimension_numbers<[1], [0], [0], [1], [0, 0, 1, 1], [], []>} : vector<16x16xbf16>, vector<16x128xbf16>, vector<16x128xf32> -> vector<16x128xf32>
    %21 = arith.truncf %20 : vector<16x128xf32> to vector<16x128xbf16>
    %22 = tpu.concatenate %21, %19 in 1 : vector<16x128xbf16>, vector<16x128xbf16> -> vector<16x256xbf16>
    %c2 = arith.constant 2 : index
    %c0_14 = arith.constant 0 : index
    %c0_15 = arith.constant 0 : index
    %23 = vector.load %arg3[%c2, %c0_14, %c0_15] : memref<5x256x128xbf16, #tpu.memory_space<vmem>>, vector<1x256x128xbf16>
    %24 = vector.shape_cast %23 : vector<1x256x128xbf16> to vector<256x128xbf16>
    %cst_16 = arith.constant dense<0.000000e+00> : vector<16x128xf32>
    %25 = tpu.matmul %22, %24, %cst_16 {dimension_numbers = #tpu.dot_dimension_numbers<[1], [0], [0], [1], [0, 0, 1, 1], [], []>} : vector<16x256xbf16>, vector<256x128xbf16>, vector<16x128xf32> -> vector<16x128xf32>
    %cst_17 = arith.constant 0.000000e+00 : f32
    %26 = vector.broadcast %cst_17 : f32 to vector<16x128xf32>
    %27 = arith.maximumf %25, %26 : vector<16x128xf32>
    %28 = arith.truncf %27 : vector<16x128xf32> to vector<16x128xbf16>
    %cst_18 = arith.constant dense<0.000000e+00> : vector<16x128xf32>
    %29 = tpu.matmul %0, %28, %cst_18 {dimension_numbers = #tpu.dot_dimension_numbers<[1], [0], [0], [1], [0, 0, 1, 1], [], []>} : vector<16x16xbf16>, vector<16x128xbf16>, vector<16x128xf32> -> vector<16x128xf32>
    %30 = arith.truncf %29 : vector<16x128xf32> to vector<16x128xbf16>
    %31 = tpu.concatenate %30, %28 in 1 : vector<16x128xbf16>, vector<16x128xbf16> -> vector<16x256xbf16>
    %c3 = arith.constant 3 : index
    %c0_19 = arith.constant 0 : index
    %c0_20 = arith.constant 0 : index
    %32 = vector.load %arg3[%c3, %c0_19, %c0_20] : memref<5x256x128xbf16, #tpu.memory_space<vmem>>, vector<1x256x128xbf16>
    %33 = vector.shape_cast %32 : vector<1x256x128xbf16> to vector<256x128xbf16>
    %cst_21 = arith.constant dense<0.000000e+00> : vector<16x128xf32>
    %34 = tpu.matmul %31, %33, %cst_21 {dimension_numbers = #tpu.dot_dimension_numbers<[1], [0], [0], [1], [0, 0, 1, 1], [], []>} : vector<16x256xbf16>, vector<256x128xbf16>, vector<16x128xf32> -> vector<16x128xf32>
    %cst_22 = arith.constant 0.000000e+00 : f32
    %35 = vector.broadcast %cst_22 : f32 to vector<16x128xf32>
    %36 = arith.maximumf %34, %35 : vector<16x128xf32>
    %37 = arith.truncf %36 : vector<16x128xf32> to vector<16x128xbf16>
    %cst_23 = arith.constant dense<0.000000e+00> : vector<16x128xf32>
    %38 = tpu.matmul %0, %37, %cst_23 {dimension_numbers = #tpu.dot_dimension_numbers<[1], [0], [0], [1], [0, 0, 1, 1], [], []>} : vector<16x16xbf16>, vector<16x128xbf16>, vector<16x128xf32> -> vector<16x128xf32>
    %39 = arith.truncf %38 : vector<16x128xf32> to vector<16x128xbf16>
    %40 = tpu.concatenate %39, %37 in 1 : vector<16x128xbf16>, vector<16x128xbf16> -> vector<16x256xbf16>
    %c4 = arith.constant 4 : index
    %c0_24 = arith.constant 0 : index
    %c0_25 = arith.constant 0 : index
    %41 = vector.load %arg3[%c4, %c0_24, %c0_25] : memref<5x256x128xbf16, #tpu.memory_space<vmem>>, vector<1x256x128xbf16>
    %42 = vector.shape_cast %41 : vector<1x256x128xbf16> to vector<256x128xbf16>
    %cst_26 = arith.constant dense<0.000000e+00> : vector<16x128xf32>
    %43 = tpu.matmul %40, %42, %cst_26 {dimension_numbers = #tpu.dot_dimension_numbers<[1], [0], [0], [1], [0, 0, 1, 1], [], []>} : vector<16x256xbf16>, vector<256x128xbf16>, vector<16x128xf32> -> vector<16x128xf32>
    %cst_27 = arith.constant 0.000000e+00 : f32
    %44 = vector.broadcast %cst_27 : f32 to vector<16x128xf32>
    %45 = arith.maximumf %43, %44 : vector<16x128xf32>
    %46 = arith.truncf %45 : vector<16x128xf32> to vector<16x128xbf16>
    %c0_28 = arith.constant 0 : index
    %c0_29 = arith.constant 0 : index
    %47 = vector.load %arg2[%c0_28, %c0_29] : memref<2x16xbf16, #tpu.memory_space<vmem>>, vector<2x16xbf16>
    %cst_30 = arith.constant dense<0.000000e+00> : vector<2x128xf32>
    %48 = tpu.matmul %47, %46, %cst_30 {dimension_numbers = #tpu.dot_dimension_numbers<[1], [0], [0], [1], [0, 0, 1, 1], [], []>} : vector<2x16xbf16>, vector<16x128xbf16>, vector<2x128xf32> -> vector<2x128xf32>
    %49 = arith.truncf %48 : vector<2x128xf32> to vector<2x128xbf16>
    %c0_31 = arith.constant 0 : index
    %c0_32 = arith.constant 0 : index
    %50 = vector.load %arg4[%c0_31, %c0_32] : memref<128x128xbf16, #tpu.memory_space<vmem>>, vector<128x128xbf16>
    %cst_33 = arith.constant dense<0.000000e+00> : vector<2x128xf32>
    %51 = tpu.matmul %49, %50, %cst_33 {dimension_numbers = #tpu.dot_dimension_numbers<[1], [0], [0], [1], [0, 0, 1, 1], [], []>} : vector<2x128xbf16>, vector<128x128xbf16>, vector<2x128xf32> -> vector<2x128xf32>
    %c0_34 = arith.constant 0 : index
    %c0_35 = arith.constant 0 : index
    %52 = vector.load %arg5[%c0_34, %c0_35] : memref<1x128xf32, #tpu.memory_space<vmem>>, vector<1x128xf32>
    %53 = vector.broadcast %52 : vector<1x128xf32> to vector<2x128xf32>
    %54 = arith.addf %51, %53 : vector<2x128xf32>
    %cst_36 = arith.constant 0.000000e+00 : f32
    %55 = vector.broadcast %cst_36 : f32 to vector<2x128xf32>
    %56 = arith.maximumf %54, %55 : vector<2x128xf32>
    %57 = arith.truncf %56 : vector<2x128xf32> to vector<2x128xbf16>
    %c0_37 = arith.constant 0 : index
    %c0_38 = arith.constant 0 : index
    %58 = vector.load %arg6[%c0_37, %c0_38] : memref<128x128xbf16, #tpu.memory_space<vmem>>, vector<128x128xbf16>
    %cst_39 = arith.constant dense<0.000000e+00> : vector<2x128xf32>
    %59 = tpu.matmul %57, %58, %cst_39 {dimension_numbers = #tpu.dot_dimension_numbers<[1], [0], [0], [1], [0, 0, 1, 1], [], []>} : vector<2x128xbf16>, vector<128x128xbf16>, vector<2x128xf32> -> vector<2x128xf32>
    %c0_40 = arith.constant 0 : index
    %c0_41 = arith.constant 0 : index
    %60 = vector.load %arg7[%c0_40, %c0_41] : memref<1x128xf32, #tpu.memory_space<vmem>>, vector<1x128xf32>
    %61 = vector.broadcast %60 : vector<1x128xf32> to vector<2x128xf32>
    %62 = arith.addf %59, %61 : vector<2x128xf32>
    %cst_42 = arith.constant dense<0xFF800000> : vector<2xf32>
    %63 = vector.multi_reduction <maximumf>, %62, %cst_42 [1] : vector<2x128xf32> to vector<2xf32>
    %64 = vector.shape_cast %63 : vector<2xf32> to vector<2x1xf32>
    %65 = vector.broadcast %64 : vector<2x1xf32> to vector<2x128xf32>
    %66 = arith.subf %62, %65 : vector<2x128xf32>
    %67 = math.exp %66 : vector<2x128xf32>
    %cst_43 = arith.constant dense<0.000000e+00> : vector<2xf32>
    %68 = vector.multi_reduction <add>, %67, %cst_43 [1] : vector<2x128xf32> to vector<2xf32>
    %69 = vector.shape_cast %68 : vector<2xf32> to vector<2x1xf32>
    %70 = math.log %69 : vector<2x1xf32>
    %71 = vector.broadcast %70 : vector<2x1xf32> to vector<2x128xf32>
    %72 = arith.subf %66, %71 : vector<2x128xf32>
    %c0_44 = arith.constant 0 : index
    %c0_45 = arith.constant 0 : index
    %73 = vector.load %arg8[%c0_44, %c0_45] : memref<2x128xf32, #tpu.memory_space<vmem>>, vector<2x128xf32>
    tpu.vector_store %arg8[%c0_44, %c0_45], %72 {strides = array<i32>} : memref<2x128xf32, #tpu.memory_space<vmem>>, vector<2x128xf32>,
    return
  }
}

</mosaic_0001>

<bundles_post_ra>
// kernel: tpu_custom_call.1
= control target key start
LH: loop header
LB: loop body
LE: loop exit
PB: predicated region body
PF: predicated region fallthrough
CT: control target
= control target key end

     0   :  { %13 = vsyncpa [#allocation3], 0  ;;  %s2035_s0 = inlined_call_operand.hbm [shape: bf16[16,128], index: 0, kind: input, shape index: {}]   ;;  %s2036_s1 = inlined_call_operand.hbm [shape: bf16[16,16], index: 1, kind: input, shape index: {}]   ;;  %s2037_s2 = inlined_call_operand.vmem [shape: bf16[2,16], index: 2, kind: input, shape index: {}]   ;;  %s2038_s3 = inlined_call_operand.hbm [shape: bf16[5,256,128], index: 3, kind: input, shape index: {}]   ;;  %s2039_s4 = inlined_call_operand.hbm [shape: bf16[128,128], index: 4, kind: input, shape index: {}]   ;;  %s2040_s5 = inlined_call_operand.vmem [shape: f32[1,128], index: 5, kind: input, shape index: {}]   ;;  %s2041_s6 = inlined_call_operand.hbm [shape: bf16[128,128], index: 6, kind: input, shape index: {}]   ;;  %s2042_s7 = inlined_call_operand.vmem [shape: f32[1,128], index: 7, kind: input, shape index: {}]   ;;  %s2043_s8 = inlined_call_operand.hbm [shape: f32[2,128], index: 8, kind: output, shape index: {}]  }
   0x1   :  { %14 = vsyncpa [#allocation6], 0 }
   0x2   :  { %15 = vsyncpa [#allocation9], 0 }
   0x3   :  { %16 = vsyncpa [#allocation4], 0  ;;  %s34_s29 = sshll.u32 %s2036_s1, 4  ;;  %s1942_s30 = smov [#allocation5]   ;;  %s35_s29 = int_to_ptr.hbm [resolvable:$true] %s34_s29 }
   0x4   :  { %s36_s9 = sshll.u32 %s1942_s30, 4  ;;  %s62_s12 = sshll.u32 %s2039_s4, 4  ;;  %s37_s9 = int_to_ptr.vmem [resolvable:$true] %s36_s9  ;;  %s63_s12 = int_to_ptr.hbm [resolvable:$true] %s62_s12 }
   0x5   :  { %s1943_s13 = smov 64   ;;  %s1944_s14 = smov 4  }
   0x6   :  { %42 = dma.hbm_to_vmem [thread:$0]  %s35_s29, 128, %s37_s9, [#allocation6], %s1943_s13, %s1943_s13, %s1944_s14  }
   0x7   :  { %s1945_s15 = smov [#allocation8]   ;;  %s21_s19 = sshll.u32 %s2035_s0, 4  ;;  %s22_s19 = int_to_ptr.hbm [resolvable:$true] %s21_s19 }
   0x8   :  { %s64_s16 = sshll.u32 %s1945_s15, 4  ;;  %s49_s21 = sshll.u32 %s2038_s3, 4  ;;  %s65_s16 = int_to_ptr.vmem [resolvable:$true] %s64_s16  ;;  %s50_s21 = int_to_ptr.hbm [resolvable:$true] %s49_s21 }
   0x9   :  { %70 = dma.hbm_to_vmem [thread:$0]  %s63_s12, 1024, %s65_s16, [#allocation9], %s1943_s13, %s1943_s13, %s1944_s14  }
   0xa   :  { %s1946_s22 = smov [#allocation2]   ;;  %s1947_s4 = smov [#allocation7]  }
   0xb   :  { %s23_s23 = sshll.u32 %s1946_s22, 4  ;;  %s51_s24 = sshll.u32 %s1947_s4, 4  ;;  %s24_s23 = int_to_ptr.vmem [resolvable:$true] %s23_s23  ;;  %s52_s24 = int_to_ptr.vmem [resolvable:$true] %s51_s24 }
   0xc   :  { %29 = dma.hbm_to_vmem [thread:$0]  %s22_s19, 128, %s24_s23, [#allocation3], %s1943_s13, %s1943_s13, %s1944_s14  }
   0xd   :  { %s77_s27 = sshll.u32 %s2041_s6, 4  ;;  %s1948_s0 = smov [#allocation10]   ;;  %s78_s27 = int_to_ptr.hbm [resolvable:$true] %s77_s27 }
   0xe   :  { %57 = dma.hbm_to_vmem [thread:$0]  %s50_s21, 10240, %s52_s24, [#allocation6], %s1943_s13, %s1943_s13, %s1944_s14  }
   0xf   :  { %s79_s28 = sshll.u32 %s1948_s0, 4  ;;  %s80_s28 = int_to_ptr.vmem [resolvable:$true] %s79_s28 }
  0x10   :  { %85 = dma.hbm_to_vmem [thread:$0]  %s78_s27, 1024, %s80_s28, [#allocation9], %s1943_s13, %s1943_s13, %s1944_s14  }
  0x11   :  { %1934 = dma.done.wait [#allocation3], 128  }
  0x12   :  { %1935 = vsyncadd [#allocation3], 4294967168 }
  0x13   :  { %1936 = dma.done.wait [#allocation6], 10368  }
  0x14   :  { %1937 = vsyncadd [#allocation6], 4294956928 }
  0x15   :  { %1938 = dma.done.wait [#allocation9], 2048  }
  0x16   :  { %1939 = vsyncadd [#allocation9], 4294965248  ;;  %v1679_v0 = vld [vmem:[#allocation2] sm:$0xff]  ;;  %v1695_v1 = vld [vmem:[#allocation7 + $0x78] sm:$0xff]  ;;  %vm124_vm0 = vcmask 130048   ;;  %vm1247_vm1 = vcmask 1041408  }
  0x17   :  { %v2010_v2 = vld [vmem:[#allocation5] sm:$0xff]  ;;  %135 = vmatpush.bf16.msra.mxu0 %v1679_v0  ;;  %292 = vmatpush.bf16.msra.mxu2 %v1695_v1  ;;  %v1694_v3 = vld [vmem:[#allocation7 + $0x70] sm:$0xff]  ;;  %v1693_v6 = vld [vmem:[#allocation7 + $0x68] sm:$0xff]  ;;  %s1268_s12 = sshll.u32 %s2043_s8, 4  ;;  %s1269_s12 = int_to_ptr.hbm [resolvable:$true] %s1268_s12 }
  0x18   :  { %v1687_v4 = vld [vmem:[#allocation7 + $0x38] sm:$0xff]  ;;  %v1686_v5 = vld [vmem:[#allocation7 + $0x30] sm:$0xff]  ;;  %v1685_v7 = vld [vmem:[#allocation7 + $0x28] sm:$0xff] }
  0x19   :  { %278 = vmatpush.bf16.msra.mxu1 %v1687_v4  ;;  %v1692_v8 = vld [vmem:[#allocation7 + $0x60] sm:$0xff]  ;;  %v1691_v10 = vld [vmem:[#allocation7 + $0x58] sm:$0xff]  ;;  %v1690_v11 = vld [vmem:[#allocation7 + $0x50] sm:$0xff] }
  0x1a   :  { %1288 = vmatmul.msk.bf16.vlgmr.msra.gmra.mxu0 %vm124_vm0, %v2010_v2  ;;  %v1684_v9 = vld [vmem:[#allocation7 + $0x20] sm:$0xff]  ;;  %v1689_v12 = vld [vmem:[#allocation7 + $0x48] sm:$0xff]  ;;  %v1683_v14 = vld [vmem:[#allocation7 + $0x18] sm:$0xff] }
  0x1b   :  { %293 = vmatpush.bf16.msra.mxu2 %v1694_v3  ;;  %v1688_v13 = vld [vmem:[#allocation7 + $0x40] sm:$0xff]  ;;  %v1682_v15 = vld [vmem:[#allocation7 + $0x10] sm:$0xff]  ;;  %v1681_v16 = vld [vmem:[#allocation7 + $0x8] sm:$0xff] }
  0x1c   :  { %v1680_v17 = vld [vmem:[#allocation7] sm:$0xff]  ;;  %v1711_v37 = vld [vmem:[#allocation7 + $0xf8] sm:$0xff]  ;;  %v1710_v40 = vld [vmem:[#allocation7 + $0xf0] sm:$0xff] }
  0x1d   :  { %279 = vmatpush.bf16.msra.mxu1 %v1686_v5  ;;  %v1703_v39 = vld [vmem:[#allocation7 + $0xb8] sm:$0xff]  ;;  %v1702_v41 = vld [vmem:[#allocation7 + $0xb0] sm:$0xff]  ;;  %v1709_v42 = vld [vmem:[#allocation7 + $0xe8] sm:$0xff] }
  0x1e   :  { %467 = vmatpush.bf16.msrb.mxu0 %v1703_v39  ;;  %v1701_v43 = vld [vmem:[#allocation7 + $0xa8] sm:$0xff]  ;;  %v1708_v44 = vld [vmem:[#allocation7 + $0xe0] sm:$0xff]  ;;  %v1707_v46 = vld [vmem:[#allocation7 + $0xd8] sm:$0xff] }
  0x1f   :  { %294 = vmatpush.bf16.msra.mxu2 %v1693_v6  ;;  %v1700_v45 = vld [vmem:[#allocation7 + $0xa0] sm:$0xff]  ;;  %v1706_v47 = vld [vmem:[#allocation7 + $0xd0] sm:$0xff]  ;;  %v1705_v48 = vld [vmem:[#allocation7 + $0xc8] sm:$0xff] }
  0x20   :  { %v1704_v49 = vld [vmem:[#allocation7 + $0xc0] sm:$0xff]  ;;  %v1699_v50 = vld [vmem:[#allocation7 + $0x98] sm:$0xff]  ;;  %v1698_v51 = vld [vmem:[#allocation7 + $0x90] sm:$0xff] }
  0x21   :  { %280 = vmatpush.bf16.msra.mxu1 %v1685_v7  ;;  %v1697_v52 = vld [vmem:[#allocation7 + $0x88] sm:$0xff]  ;;  %v1696_v53 = vld [vmem:[#allocation7 + $0x80] sm:$0xff]  ;;  %v1727_v55 = vld [vmem:[#allocation7 + $0x178] sm:$0xff] }
  0x22   :  { %468 = vmatpush.bf16.msrb.mxu0 %v1702_v41  ;;  %v1726_v57 = vld [vmem:[#allocation7 + $0x170] sm:$0xff]  ;;  %v1725_v62 = vld [vmem:[#allocation7 + $0x168] sm:$0xff]  ;;  %v1723_v1 = vld [vmem:[#allocation7 + $0x158] sm:$0xff] }
  0x23   :  { %295 = vmatpush.bf16.msra.mxu2 %v1692_v8  ;;  %v1722_v3 = vld [vmem:[#allocation7 + $0x150] sm:$0xff]  ;;  %v1721_v4 = vld [vmem:[#allocation7 + $0x148] sm:$0xff]  ;;  %v1720_v5 = vld [vmem:[#allocation7 + $0x140] sm:$0xff] }
  0x24   :  { %v1719_v6 = vld [vmem:[#allocation7 + $0x138] sm:$0xff]  ;;  %v1718_v7 = vld [vmem:[#allocation7 + $0x130] sm:$0xff]  ;;  %v1717_v8 = vld [vmem:[#allocation7 + $0x128] sm:$0xff] }
  0x25   :  { %281 = vmatpush.bf16.msra.mxu1 %v1684_v9 }
  0x26   :  { %469 = vmatpush.bf16.msrb.mxu0 %v1701_v43 }
  0x27   :  { %296 = vmatpush.bf16.msra.mxu2 %v1691_v10 }
  0x29   :  { %282 = vmatpush.bf16.msra.mxu1 %v1683_v14 }
  0x2a   :  { %470 = vmatpush.bf16.msrb.mxu0 %v1700_v45 }
  0x2b   :  { %297 = vmatpush.bf16.msra.mxu2 %v1690_v11  ;;  %v1716_v11 = vld [vmem:[#allocation7 + $0x120] sm:$0xff] }
  0x2d   :  { %283 = vmatpush.bf16.msra.mxu1 %v1682_v15 }
  0x2e   :  { %471 = vmatpush.bf16.msrb.mxu0 %v1699_v50  ;;  %v1734_v50 = vld [vmem:[#allocation7 + $0x1b0] sm:$0xff] }
  0x2f   :  { %298 = vmatpush.bf16.msra.mxu2 %v1689_v12 }
  0x31   :  { %284 = vmatpush.bf16.msra.mxu1 %v1681_v16 }
  0x32   :  { %472 = vmatpush.bf16.msrb.mxu0 %v1698_v51  ;;  %v1741_v51 = vld [vmem:[#allocation7 + $0x1e8] sm:$0xff] }
  0x33   :  { %299 = vmatpush.bf16.msra.mxu2 %v1688_v13 }
  0x35   :  { %285 = vmatpush.bf16.msra.mxu1 %v1680_v17 }
  0x36   :  { %300 = vmatmul.bf16.vlgmr.msra.gmra.mxu2 %v1679_v0  ;;  %473 = vmatpush.bf16.msrb.mxu0 %v1697_v52  ;;  %v1724_v0 = vld [vmem:[#allocation7 + $0x160] sm:$0xff]  ;;  %v1733_v52 = vld [vmem:[#allocation7 + $0x1a8] sm:$0xff] }
  0x37   :  { %656 = vmatpush.bf16.msrb.mxu2 %v1719_v6 }
  0x3a   :  { %474 = vmatpush.bf16.msrb.mxu0 %v1696_v53  ;;  %v1740_v53 = vld [vmem:[#allocation7 + $0x1e0] sm:$0xff] }
  0x3b   :  { %657 = vmatpush.bf16.msrb.mxu2 %v1718_v7 }
  0x3e   :  { %670 = vmatpush.bf16.msra.mxu0 %v1727_v55  ;;  %v1739_v55 = vld [vmem:[#allocation7 + $0x1d8] sm:$0xff] }
  0x3f   :  { %658 = vmatpush.bf16.msrb.mxu2 %v1717_v8  ;;  %v1757_v8 = vld [vmem:[#allocation7 + $0x268] sm:$0xff] }
  0x42   :  { %671 = vmatpush.bf16.msra.mxu0 %v1726_v57  ;;  %v1737_v57 = vld [vmem:[#allocation7 + $0x1c8] sm:$0xff] }
  0x43   :  { %659 = vmatpush.bf16.msrb.mxu2 %v1716_v11  ;;  %v1755_v11 = vld [vmem:[#allocation7 + $0x258] sm:$0xff] }
  0x46   :  { %672 = vmatpush.bf16.msra.mxu0 %v1725_v62  ;;  %v1728_v62 = vld [vmem:[#allocation7 + $0x180] sm:$0xff] }
  0x4a   :  { %673 = vmatpush.bf16.msra.mxu0 %v1724_v0  ;;  %v1759_v0 = vld [vmem:[#allocation7 + $0x278] sm:$0xff] }
  0x4e   :  { %674 = vmatpush.bf16.msra.mxu0 %v1723_v1 }
  0x52   :  { %675 = vmatpush.bf16.msra.mxu0 %v1722_v3  ;;  %v1758_v3 = vld [vmem:[#allocation7 + $0x270] sm:$0xff] }
  0x56   :  { %676 = vmatpush.bf16.msra.mxu0 %v1721_v4 }
  0x5a   :  { %677 = vmatpush.bf16.msra.mxu0 %v1720_v5 }
  0x97   :  { %v137_v18 = vpop.f32.mrf.mxu0 }
  0x98   :  { %v142_v19 = vpack.c.bf16 %v137_v18, %v137_v18 }
  0x9a   :  { %v146_v22 = vunpack.c.l.b16 %v142_v19 }
  0x9f   :  { %v139_v20 = vpop.f32.mrf.mxu0 }
  0xa0   :  { %v143_v21 = vpack.c.bf16 %v139_v20, %v139_v20 }
  0xa2   :  { %v147_v23 = vunpack.c.l.b16 %v143_v21 }
  0xa4   :  { %v148_v24 = vpack.c.b16 %v147_v23, %v146_v22  ;;  %v1715_v23 = vld [vmem:[#allocation7 + $0x118] sm:$0xff] }
  0xa5   :  { %660 = vmatpush.bf16.msrb.mxu2 %v1715_v23 }
  0xa6   :  { %286 = vmatmul.bf16.vlgmr.msra.gmra.mxu1 %v148_v24  ;;  %v1714_v24 = vld [vmem:[#allocation7 + $0x110] sm:$0xff] }
  0xa9   :  { %661 = vmatpush.bf16.msrb.mxu2 %v1714_v24 }
  0xb9   :  { %v301_v25 = vpop.f32.mrf.mxu2 }
  0xc1   :  { %v303_v29 = vpop.f32.mrf.mxu2 }
 0x123   :  { %v287_v26 = vpop.f32.mrf.mxu1 }
 0x124   :  { %v302_v27 = vadd.f32 %v301_v25, %v287_v26  ;;  %v1713_v25 = vld [vmem:[#allocation7 + $0x108] sm:$0xff]  ;;  %v1712_v26 = vld [vmem:[#allocation7 + $0x100] sm:$0xff] }
 0x125   :  { %662 = vmatpush.bf16.msrb.mxu2 %v1713_v25 }
 0x126   :  { %v306_v28 = vmax.f32 %v302_v27, 0.0 }
 0x128   :  { %v308_v32 = vpack.c.bf16 %v306_v28, %v306_v28 }
 0x129   :  { %663 = vmatpush.bf16.msrb.mxu2 %v1712_v26 }
 0x12a   :  { %v312_v35 = vunpack.c.l.b16 %v308_v32 }
 0x12b   :  { %v289_v30 = vpop.f32.mrf.mxu1 }
 0x12c   :  { %v304_v31 = vadd.f32 %v303_v29, %v289_v30 }
 0x12e   :  { %v307_v33 = vmax.f32 %v304_v31, 0.0 }
 0x130   :  { %v309_v34 = vpack.c.bf16 %v307_v33, %v307_v33 }
 0x132   :  { %v313_v36 = vunpack.c.l.b16 %v309_v34 }
 0x134   :  { %v314_v38 = vpack.c.b16 %v313_v36, %v312_v35 }
 0x136   :  { %323 = vmatpush.bf16.msra.mxu3 %v314_v38 }
 0x139   :  { %1353 = vmatmul.msk.bf16.vlgmr.msra.gmra.mxu3 %vm124_vm0, %v2010_v2 }
 0x13a   :  { %481 = vmatpush.bf16.msrb.mxu3 %v1711_v37 }
 0x13e   :  { %482 = vmatpush.bf16.msrb.mxu3 %v1710_v40 }
 0x142   :  { %483 = vmatpush.bf16.msrb.mxu3 %v1709_v42 }
 0x146   :  { %484 = vmatpush.bf16.msrb.mxu3 %v1708_v44 }
 0x14a   :  { %485 = vmatpush.bf16.msrb.mxu3 %v1707_v46  ;;  %v1743_v46 = vld [vmem:[#allocation7 + $0x1f8] sm:$0xff] }
 0x14e   :  { %486 = vmatpush.bf16.msrb.mxu3 %v1706_v47 }
 0x152   :  { %487 = vmatpush.bf16.msrb.mxu3 %v1705_v48  ;;  %v1735_v48 = vld [vmem:[#allocation7 + $0x1b8] sm:$0xff] }
 0x156   :  { %488 = vmatpush.bf16.msrb.mxu3 %v1704_v49  ;;  %v1742_v49 = vld [vmem:[#allocation7 + $0x1f0] sm:$0xff] }
 0x159   :  { %489 = vmatmul.bf16.vlgmr.msrb.gmra.mxu3 %v314_v38 }
 0x1bc   :  { %v325_v54 = vpop.f32.mrf.mxu3 }
 0x1bd   :  { %v330_v56 = vpack.c.bf16 %v325_v54, %v325_v54  ;;  %v1732_v54 = vld [vmem:[#allocation7 + $0x1a0] sm:$0xff] }
 0x1bf   :  { %v334_v60 = vunpack.c.l.b16 %v330_v56  ;;  %v1738_v56 = vld [vmem:[#allocation7 + $0x1d0] sm:$0xff] }
 0x1c4   :  { %v327_v58 = vpop.f32.mrf.mxu3 }
 0x1c5   :  { %v331_v59 = vpack.c.bf16 %v327_v58, %v327_v58  ;;  %v1736_v58 = vld [vmem:[#allocation7 + $0x1c0] sm:$0xff] }
 0x1c7   :  { %v335_v61 = vunpack.c.l.b16 %v331_v59  ;;  %v1731_v59 = vld [vmem:[#allocation7 + $0x198] sm:$0xff] }
 0x1c9   :  { %v336_v63 = vpack.c.b16 %v335_v61, %v334_v60  ;;  %v1730_v60 = vld [vmem:[#allocation7 + $0x190] sm:$0xff]  ;;  %v1729_v61 = vld [vmem:[#allocation7 + $0x188] sm:$0xff] }
 0x1cb   :  { %475 = vmatmul.bf16.vlgmr.msrb.gmra.mxu0 %v336_v63 }
 0x1dc   :  { %v490_v9 = vpop.f32.mrf.mxu3 }
 0x1e4   :  { %v492_v14 = vpop.f32.mrf.mxu3 }
 0x248   :  { %v476_v10 = vpop.f32.mrf.mxu0 }
 0x249   :  { %v491_v12 = vadd.f32 %v490_v9, %v476_v10  ;;  %v1756_v10 = vld [vmem:[#allocation7 + $0x260] sm:$0xff] }
 0x24b   :  { %v495_v13 = vmax.f32 %v491_v12, 0.0  ;;  %v1754_v12 = vld [vmem:[#allocation7 + $0x250] sm:$0xff] }
 0x24d   :  { %v497_v17 = vpack.c.bf16 %v495_v13, %v495_v13  ;;  %v1753_v13 = vld [vmem:[#allocation7 + $0x248] sm:$0xff] }
 0x24f   :  { %v501_v20 = vunpack.c.l.b16 %v497_v17 }
 0x250   :  { %v478_v15 = vpop.f32.mrf.mxu0 }
 0x251   :  { %v493_v16 = vadd.f32 %v492_v14, %v478_v15  ;;  %v1752_v14 = vld [vmem:[#allocation7 + $0x240] sm:$0xff] }
 0x253   :  { %v496_v18 = vmax.f32 %v493_v16, 0.0 }
 0x255   :  { %v498_v19 = vpack.c.bf16 %v496_v18, %v496_v18 }
 0x257   :  { %v502_v21 = vunpack.c.l.b16 %v498_v19 }
 0x259   :  { %v503_v22 = vpack.c.b16 %v502_v21, %v501_v20 }
 0x25b   :  { %512 = vmatpush.bf16.msrb.mxu1 %v503_v22  ;;  %678 = vmatmul.bf16.vlgmr.msra.gmra.mxu0 %v503_v22 }
 0x25e   :  { %1418 = vmatmul.msk.bf16.vlgmr.msrb.gmra.mxu1 %vm124_vm0, %v2010_v2 }
 0x25f   :  { %845 = vmatpush.bf16.msra.mxu1 %v1735_v48  ;;  %v1763_v48 = vld [vmem:[#allocation8 + $0x18] sm:$0xff] }
 0x263   :  { %846 = vmatpush.bf16.msra.mxu1 %v1734_v50 }
 0x267   :  { %847 = vmatpush.bf16.msra.mxu1 %v1733_v52 }
 0x26b   :  { %848 = vmatpush.bf16.msra.mxu1 %v1732_v54 }
 0x26f   :  { %849 = vmatpush.bf16.msra.mxu1 %v1731_v59  ;;  %v1760_v59 = vld [vmem:[#allocation8] sm:$0xff] }
 0x273   :  { %850 = vmatpush.bf16.msra.mxu1 %v1730_v60  ;;  %v1775_v60 = vld [vmem:[#allocation10 + $0x38] sm:$0xff] }
 0x277   :  { %851 = vmatpush.bf16.msra.mxu1 %v1729_v61  ;;  %v1774_v61 = vld [vmem:[#allocation10 + $0x30] sm:$0xff] }
 0x27b   :  { %852 = vmatpush.bf16.msra.mxu1 %v1728_v62  ;;  %v1773_v62 = vld [vmem:[#allocation10 + $0x28] sm:$0xff] }
 0x27f   :  { %1048 = vmatpush.bf16.msrb.mxu1 %v1759_v0  ;;  %v1771_v0 = vld [vmem:[#allocation10 + $0x18] sm:$0xff] }
 0x283   :  { %1049 = vmatpush.bf16.msrb.mxu1 %v1758_v3 }
 0x287   :  { %1050 = vmatpush.bf16.msrb.mxu1 %v1757_v8  ;;  %v1784_v8 = vld [vmem:[%s2040_s5] ss:$0 sm:$0xff]  ;;  %s1949_s5 = smov [#allocation11]  }
 0x288   :  { %s1266_s10 = sshll.u32 %s1949_s5, 4  ;;  %s1267_s10 = int_to_ptr.vmem [resolvable:$true] %s1266_s10 }
 0x28b   :  { %1051 = vmatpush.bf16.msrb.mxu1 %v1756_v10 }
 0x28f   :  { %1052 = vmatpush.bf16.msrb.mxu1 %v1755_v11 }
 0x293   :  { %1053 = vmatpush.bf16.msrb.mxu1 %v1754_v12 }
 0x297   :  { %1054 = vmatpush.bf16.msrb.mxu1 %v1753_v13 }
 0x29b   :  { %1055 = vmatpush.bf16.msrb.mxu1 %v1752_v14  ;;  %v1785_v14 = vld [vmem:[%s2042_s7] ss:$0 sm:$0xff] }
 0x2d8   :  { %v679_v34 = vpop.f32.mrf.mxu0 }
 0x2db   :  { %v514_v27 = vpop.f32.mrf.mxu1 }
 0x2dc   :  { %v519_v28 = vpack.c.bf16 %v514_v27, %v514_v27  ;;  %v1751_v27 = vld [vmem:[#allocation7 + $0x238] sm:$0xff] }
 0x2de   :  { %v523_v31 = vunpack.c.l.b16 %v519_v28 }
 0x2e0   :  { %v681_v38 = vpop.f32.mrf.mxu0 }
 0x2e3   :  { %v516_v29 = vpop.f32.mrf.mxu1 }
 0x2e4   :  { %v520_v30 = vpack.c.bf16 %v516_v29, %v516_v29  ;;  %v1750_v29 = vld [vmem:[#allocation7 + $0x230] sm:$0xff] }
 0x2e6   :  { %v524_v32 = vunpack.c.l.b16 %v520_v30  ;;  %v1749_v30 = vld [vmem:[#allocation7 + $0x228] sm:$0xff] }
 0x2e8   :  { %v525_v33 = vpack.c.b16 %v524_v32, %v523_v31  ;;  %v1748_v31 = vld [vmem:[#allocation7 + $0x220] sm:$0xff]  ;;  %v1747_v32 = vld [vmem:[#allocation7 + $0x218] sm:$0xff] }
 0x2ea   :  { %664 = vmatmul.bf16.vlgmr.msrb.gmra.mxu2 %v525_v33  ;;  %v1746_v33 = vld [vmem:[#allocation7 + $0x210] sm:$0xff] }
 0x36d   :  { %v665_v35 = vpop.f32.mrf.mxu2 }
 0x36e   :  { %v680_v36 = vadd.f32 %v679_v34, %v665_v35  ;;  %v1745_v34 = vld [vmem:[#allocation7 + $0x208] sm:$0xff]  ;;  %v1744_v35 = vld [vmem:[#allocation7 + $0x200] sm:$0xff] }
 0x370   :  { %v684_v37 = vmax.f32 %v680_v36, 0.0 }
 0x372   :  { %v686_v41 = vpack.c.bf16 %v684_v37, %v684_v37 }
 0x374   :  { %v690_v44 = vunpack.c.l.b16 %v686_v41 }
 0x375   :  { %v667_v39 = vpop.f32.mrf.mxu2 }
 0x376   :  { %v682_v40 = vadd.f32 %v681_v38, %v667_v39 }
 0x378   :  { %v685_v42 = vmax.f32 %v682_v40, 0.0 }
 0x37a   :  { %v687_v43 = vpack.c.bf16 %v685_v42, %v685_v42  ;;  %v1767_v42 = vld [vmem:[#allocation8 + $0x38] sm:$0xff] }
 0x37c   :  { %v691_v45 = vunpack.c.l.b16 %v687_v43  ;;  %v1766_v43 = vld [vmem:[#allocation8 + $0x30] sm:$0xff] }
 0x37e   :  { %v692_v47 = vpack.c.b16 %v691_v45, %v690_v44  ;;  %v1765_v44 = vld [vmem:[#allocation8 + $0x28] sm:$0xff]  ;;  %v1764_v45 = vld [vmem:[#allocation8 + $0x20] sm:$0xff] }
 0x380   :  { %701 = vmatpush.bf16.msra.mxu3 %v692_v47 }
 0x383   :  { %1483 = vmatmul.msk.bf16.vlgmr.msra.gmra.mxu3 %vm124_vm0, %v2010_v2 }
 0x384   :  { %859 = vmatpush.bf16.msrb.mxu3 %v1743_v46 }
 0x388   :  { %860 = vmatpush.bf16.msrb.mxu3 %v1742_v49  ;;  %v1762_v49 = vld [vmem:[#allocation8 + $0x10] sm:$0xff] }
 0x38c   :  { %861 = vmatpush.bf16.msrb.mxu3 %v1741_v51 }
 0x390   :  { %862 = vmatpush.bf16.msrb.mxu3 %v1740_v53  ;;  %v1761_v53 = vld [vmem:[#allocation8 + $0x8] sm:$0xff] }
 0x394   :  { %863 = vmatpush.bf16.msrb.mxu3 %v1739_v55 }
 0x398   :  { %864 = vmatpush.bf16.msrb.mxu3 %v1738_v56 }
 0x39c   :  { %865 = vmatpush.bf16.msrb.mxu3 %v1737_v57 }
 0x3a0   :  { %866 = vmatpush.bf16.msrb.mxu3 %v1736_v58  ;;  %v1065_v58 = vld [vmem:[%s2037_s2] sm:$0x1] }
 0x3a3   :  { %867 = vmatmul.bf16.vlgmr.msrb.gmra.mxu3 %v692_v47 }
 0x3a4   :  { %1151 = vmatpush.bf16.msra.mxu3 %v1767_v42 }
 0x3a8   :  { %1152 = vmatpush.bf16.msra.mxu3 %v1766_v43 }
 0x3ac   :  { %1153 = vmatpush.bf16.msra.mxu3 %v1765_v44 }
 0x3b0   :  { %1154 = vmatpush.bf16.msra.mxu3 %v1764_v45 }
 0x3b4   :  { %1155 = vmatpush.bf16.msra.mxu3 %v1763_v48 }
 0x3b8   :  { %1156 = vmatpush.bf16.msra.mxu3 %v1762_v49 }
 0x3bc   :  { %1157 = vmatpush.bf16.msra.mxu3 %v1761_v53 }
 0x3c0   :  { %1158 = vmatpush.bf16.msra.mxu3 %v1760_v59 }
 0x406   :  { %v703_v63 = vpop.f32.mrf.mxu3 }
 0x407   :  { %v708_v1 = vpack.c.bf16 %v703_v63, %v703_v63  ;;  %v1772_v63 = vld [vmem:[#allocation10 + $0x20] sm:$0xff] }
 0x409   :  { %v712_v6 = vunpack.c.l.b16 %v708_v1  ;;  %v1770_v1 = vld [vmem:[#allocation10 + $0x10] sm:$0xff] }
 0x40e   :  { %v705_v4 = vpop.f32.mrf.mxu3 }
 0x40f   :  { %v709_v5 = vpack.c.bf16 %v705_v4, %v705_v4 }
 0x411   :  { %v713_v7 = vunpack.c.l.b16 %v709_v5 }
 0x413   :  { %v714_v9 = vpack.c.b16 %v713_v7, %v712_v6  ;;  %v1769_v6 = vld [vmem:[#allocation10 + $0x8] sm:$0xff]  ;;  %v1768_v7 = vld [vmem:[#allocation10] sm:$0xff] }
 0x415   :  { %853 = vmatmul.bf16.vlgmr.msra.gmra.mxu1 %v714_v9 }
 0x426   :  { %v868_v15 = vpop.f32.mrf.mxu3 }
 0x42e   :  { %v870_v19 = vpop.f32.mrf.mxu3 }
 0x492   :  { %v854_v16 = vpop.f32.mrf.mxu1 }
 0x493   :  { %v869_v17 = vadd.f32 %v868_v15, %v854_v16 }
 0x495   :  { %v873_v18 = vmax.f32 %v869_v17, 0.0 }
 0x497   :  { %v875_v22 = vpack.c.bf16 %v873_v18, %v873_v18 }
 0x499   :  { %v879_v25 = vunpack.c.l.b16 %v875_v22 }
 0x49a   :  { %v856_v20 = vpop.f32.mrf.mxu1 }
 0x49b   :  { %v871_v21 = vadd.f32 %v870_v19, %v856_v20 }
 0x49d   :  { %v874_v23 = vmax.f32 %v871_v21, 0.0 }
 0x49f   :  { %v876_v24 = vpack.c.bf16 %v874_v23, %v874_v23 }
 0x4a1   :  { %v880_v26 = vunpack.c.l.b16 %v876_v24 }
 0x4a3   :  { %v881_v28 = vpack.c.b16 %v880_v26, %v879_v25 }
 0x4a5   :  { %890 = vmatpush.bf16.msrb.mxu0 %v881_v28  ;;  %1056 = vmatmul.bf16.vlgmr.msrb.gmra.mxu1 %v881_v28 }
 0x4a8   :  { %1548 = vmatmul.msk.bf16.vlgmr.msrb.gmra.mxu0 %vm124_vm0, %v2010_v2 }
 0x4a9   :  { %1034 = vmatpush.bf16.msra.mxu0 %v1751_v27 }
 0x4ad   :  { %1035 = vmatpush.bf16.msra.mxu0 %v1750_v29 }
 0x4b1   :  { %1036 = vmatpush.bf16.msra.mxu0 %v1749_v30 }
 0x4b5   :  { %1037 = vmatpush.bf16.msra.mxu0 %v1748_v31 }
 0x4b9   :  { %1038 = vmatpush.bf16.msra.mxu0 %v1747_v32 }
 0x4bd   :  { %1039 = vmatpush.bf16.msra.mxu0 %v1746_v33 }
 0x4c1   :  { %1040 = vmatpush.bf16.msra.mxu0 %v1745_v34 }
 0x4c5   :  { %1041 = vmatpush.bf16.msra.mxu0 %v1744_v35 }
 0x522   :  { %v1057_v46 = vpop.f32.mrf.mxu1 }
 0x525   :  { %v892_v36 = vpop.f32.mrf.mxu0 }
 0x526   :  { %v897_v37 = vpack.c.bf16 %v892_v36, %v892_v36 }
 0x528   :  { %v901_v40 = vunpack.c.l.b16 %v897_v37 }
 0x52a   :  { %v1059_v51 = vpop.f32.mrf.mxu1 }
 0x52d   :  { %v894_v38 = vpop.f32.mrf.mxu0 }
 0x52e   :  { %v898_v39 = vpack.c.bf16 %v894_v38, %v894_v38 }
 0x530   :  { %v902_v41 = vunpack.c.l.b16 %v898_v39 }
 0x532   :  { %v903_v2 = vpack.c.b16 %v902_v41, %v901_v40 }
 0x534   :  { %1042 = vmatmul.bf16.vlgmr.msra.gmra.mxu0 %v903_v2 }
 0x5b1   :  { %v1043_v47 = vpop.f32.mrf.mxu0 }
 0x5b2   :  { %v1058_v50 = vadd.f32 %v1057_v46, %v1043_v47 }
 0x5b4   :  { %v1062_v55 = vmax.f32 %v1058_v50, 0.0 }
 0x5b9   :  { %v1045_v52 = vpop.f32.mrf.mxu0 }
 0x5ba   :  { %v1060_v54 = vadd.f32 %v1059_v51, %v1045_v52 }
 0x5bc   :  { %v1063_v56 = vmax.f32 %v1060_v54, 0.0 }
 0x5be   :  { %v1064_v57 = vpack.c.bf16 %v1063_v56, %v1062_v55 }
 0x5c0   :  { %1076 = vmatpush.bf16.msra.mxu2 %v1064_v57 }
 0x5c3   :  { %1613 = vmatmul.msk.bf16.vlgmr.msra.gmra.mxu2 %vm124_vm0, %v1065_v58 }
 0x5c4   :  { %1234 = vmatpush.bf16.msrb.mxu2 %v1775_v60 }
 0x5c8   :  { %1235 = vmatpush.bf16.msrb.mxu2 %v1774_v61 }
 0x5cc   :  { %1236 = vmatpush.bf16.msrb.mxu2 %v1773_v62 }
 0x5d0   :  { %1237 = vmatpush.bf16.msrb.mxu2 %v1772_v63 }
 0x5d4   :  { %1238 = vmatpush.bf16.msrb.mxu2 %v1771_v0 }
 0x5d8   :  { %1239 = vmatpush.bf16.msrb.mxu2 %v1770_v1 }
 0x5dc   :  { %1240 = vmatpush.bf16.msrb.mxu2 %v1769_v6 }
 0x5e0   :  { %1241 = vmatpush.bf16.msrb.mxu2 %v1768_v7 }
 0x646   :  { %v1078_v3 = vpop.f32.mrf.mxu2 }
 0x647   :  { %v1082_v4 = vpack.c.bf16 %v1078_v3, %v1078_v3 }
 0x649   :  { %1159 = vmatmul.bf16.vlgmr.msra.gmra.mxu3 %v1082_v4 }
 0x64e   :  { %v1080_v5 = vpop.f32.mrf.mxu2 }
 0x6cc   :  { %v1160_v9 = vpop.f32.mrf.mxu3 }
 0x6cd   :  { %v1161_v10 = vadd.f32 %v1784_v8, %v1160_v9 }
 0x6cf   :  { %v1164_v11 = vmax.f32 %v1161_v10, 0.0 }
 0x6d1   :  { %v1165_v12 = vpack.c.bf16 %v1164_v11, %v1164_v11 }
 0x6d3   :  { %1242 = vmatmul.bf16.vlgmr.msrb.gmra.mxu2 %v1165_v12 }
 0x6d4   :  { %v1162_v13 = vpop.f32.mrf.mxu3 }
 0x756   :  { %v1243_v15 = vpop.f32.mrf.mxu2 }
 0x757   :  { %v1244_v16 = vadd.f32 %v1785_v14, %v1243_v15 }
 0x759   :  { %v1248_v17 = vsel %vm1247_vm1, %v1244_v16, -inf }
 0x75a   :  { %1249 = vmax.xlane.f32.xlu0 %v1248_v17 }
 0x75e   :  { %v1245_v18 = vpop.f32.mrf.mxu2 }
 0x7cd   :  { %v1250_v19 = vpop.xlane.xlu0 %1249 }
 0x7ce   :  { %v1251_v20 = vsub.f32 %v1244_v16, %v1250_v19 }
 0x7d0   :  { %v1252_v21 = vmul.f32 1.442695, %v1251_v20 }
 0x7d2   :  { %1786 = vpow2.f32 %v1252_v21 }
 0x7d8   :  { %v1787_v22 = vpop.eup %1786 }
 0x7d9   :  { %v1254_v23 = vsel %vm1247_vm1, %v1787_v22, 0.0 }
 0x7da   :  { %1255 = vadd.xlane.f32.xlu0 %v1254_v23 }
 0x84d   :  { %v1256_v24 = vpop.xlane.xlu0 %1255 }
 0x84e   :  { %1788 = vlog2.f32 %v1256_v24 }
 0x854   :  { %v1789_v25 = vpop.eup %1788 }
 0x855   :  { %v1258_v26 = vmul.f32 0.6931472, %v1789_v25 }
 0x857   :  { %v1259_v27 = vsub.f32 %v1251_v20, %v1258_v26 }
 0x859   :  { %1260 = vst [vmem:[#allocation11] sm:$0x3] %v1259_v27 }
 0x85a   :  { %1271 = dma.vmem_to_hbm [thread:$0]  %s1267_s10, 32, %s1269_s12, [#allocation4]  }
 0x85b   :  { %1940 = dma.done.wait [#allocation4], 32  }
 0x85c   :  { %1941 = vsyncadd [#allocation4], 4294967264 }
 0x85d   :  { %1276 = vsyncpa [#allocation3], 1 }
 0x85e   :  { %1277 = vsyncpa [#allocation6], 1 }
 0x85f   :  { %1278 = vsyncpa [#allocation9], 1 }
 0x860   :  { %1279 = vsyncpa [#allocation4], 1 }

</bundles_post_ra>
